<compile_context>
chip_gen: v6e
topology: v6e:2x2x1
jax: 0.10.0
libtpu: 0.0.40
codegen_flags: <defaults>
</compile_context>

<pallas_src>
import functools
import math

import jax
import jax.numpy as jnp
from jax import tree_util
from jax.experimental import pallas as pl
from jax.experimental.pallas import tpu as pltpu

BN_EPS = 1e-5
NUM_CLASSES = 20
RESNET50_CFG = [(64, 3, 1), (128, 4, 2), (256, 6, 2), (512, 3, 2)]  # (planes, blocks, stride)

_VMEM_LIMIT = 32 * 1024 * 1024    # scoped VMEM ceiling handed to Mosaic (safe on v5e/v6e/v7x)
_VMEM_BUDGET = 24 * 1024 * 1024   # self-imposed per-call tile footprint budget
_MAX_TK = 4096


def round_up(x, m):
    return (x + m - 1) // m * m


# --------------------------------------------------------------------------
# Best-effort hardware capability detection (fully guarded; defaults are safe)
# --------------------------------------------------------------------------
def _detect_num_tensorcores():
    """TensorCores per device (v7x has 2).  Defaults to 1 (v6e/v5e behavior)."""
    try:
        info = pltpu.get_tpu_info()
        for attr in ("num_cores", "cores_per_chip", "num_tensorcores", "tensorcore_count"):
            v = getattr(info, attr, None)
            if v:
                return max(1, int(v))
    except Exception:
        pass
    try:
        d = jax.devices()[0]
        for attr in ("num_cores", "core_count"):
            v = getattr(d, attr, None)
            if v:
                return max(1, int(v))
    except Exception:
        pass
    return 1


def _probe_buffered():
    """Functional probe: does pipeline_mode=pl.Buffered(...) lower & run here?"""
    try:
        buffered = pl.Buffered(3)

        def k(a_ref, w_ref, o_ref, acc_ref):
            kk = pl.program_id(0)

            @pl.when(kk == 0)
            def _():
                acc_ref[...] = jnp.zeros_like(acc_ref)

            acc_ref[...] += jnp.dot(a_ref[...], w_ref[...],
                                    preferred_element_type=jnp.float32)

            @pl.when(kk == pl.num_programs(0) - 1)
            def _():
                o_ref[...] = acc_ref[...]

        a = jnp.zeros((8, 256), jnp.bfloat16)
        w = jnp.zeros((256, 128), jnp.bfloat16)
        out = pl.pallas_call(
            k,
            out_shape=jax.ShapeDtypeStruct((8, 128), jnp.float32),
            grid_spec=pltpu.PrefetchScalarGridSpec(
                num_scalar_prefetch=0, grid=(2,),
                in_specs=[pl.BlockSpec((8, 128), lambda kk: (0, kk)),
                          pl.BlockSpec((128, 128), lambda kk: (kk, 0),
                                       pipeline_mode=buffered)],
                out_specs=pl.BlockSpec((8, 128), lambda kk: (0, 0)),
                scratch_shapes=[pltpu.VMEM((8, 128), jnp.float32)]),
        )(a, w)
        jax.block_until_ready(out)
        return True
    except Exception:
        return False


_NUM_TC = _detect_num_tensorcores()
_HAS_BUFFERED = _probe_buffered()


# --------------------------------------------------------------------------
# Packed parameters (pre-transposed / BN-scale-folded / padded / bf16)
# --------------------------------------------------------------------------
@tree_util.register_pytree_node_class
class PackedConv:
    def __init__(self, w, b, K, O, kH, kW):
        self.w, self.b = w, b                           # (Kp,Np) bf16, (1,Np) f32
        self.K, self.O, self.kH, self.kW = K, O, kH, kW  # static ints

    def tree_flatten(self):
        return (self.w, self.b), (self.K, self.O, self.kH, self.kW)

    @classmethod
    def tree_unflatten(cls, aux, children):
        return cls(*children, *aux)


@tree_util.register_pytree_node_class
class PackedDeconv:
    def __init__(self, w, b, K, O):
        self.w, self.b = w, b                           # (4,Kp,Np) bf16, (1,Np) f32
        self.K, self.O = K, O

    def tree_flatten(self):
        return (self.w, self.b), (self.K, self.O)

    @classmethod
    def tree_unflatten(cls, aux, children):
        return cls(*children, *aux)


def pack_conv(w_oihw, scale, bias):
    """Pack a PyTorch-layout conv weight (O, Cin, kH, kW) into matmul form.
    The per-channel BN scale is folded into the bf16 weight columns."""
    O, Cin, kH, kW = w_oihw.shape
    K = kH * kW * Cin
    Kp = round_up(K, 128)
    Np = round_up(O, 128)
    Wm = jnp.transpose(w_oihw, (2, 3, 1, 0)).reshape(K, O)
    Wm = Wm * scale.astype(jnp.float32)[None, :]
    Wm = jnp.pad(Wm, ((0, Kp - K), (0, Np - O))).astype(jnp.bfloat16)
    b = jnp.pad(bias.astype(jnp.float32).reshape(1, -1), ((0, 0), (0, Np - O)))
    return PackedConv(Wm, b, K, O, kH, kW)


def pack_deconv(w_ciohw, scale, bias):
    """Decompose ConvTranspose2d(k=4, s=2, p=1) weight (Cin, Cout, 4, 4) into
    4 parity 2x2 sub-conv matrices stacked on a leading axis (one pallas_call
    per deconv).  Parity order: (py, px) in ((0,0),(0,1),(1,0),(1,1))."""
    Cin, Cout = w_ciohw.shape[0], w_ciohw.shape[1]
    K = 4 * Cin
    Kp, Np = round_up(K, 128), round_up(Cout, 128)
    mats = []
    for py in (0, 1):
        kh_idx = (3, 1) if py == 0 else (2, 0)
        for px in (0, 1):
            kw_idx = (3, 1) if px == 0 else (2, 0)
            sub = jnp.take(w_ciohw, jnp.array(kh_idx), axis=2)
            sub = jnp.take(sub, jnp.array(kw_idx), axis=3)          # (Cin, Cout, 2, 2)
            sub = jnp.transpose(sub, (2, 3, 0, 1)).reshape(K, Cout)  # (kh,kw,Cin) x Cout
            mats.append(sub)
    Wm = jnp.stack(mats, axis=0) * scale.astype(jnp.float32)[None, None, :]
    Wm = jnp.pad(Wm, ((0, 0), (0, Kp - K), (0, Np - Cout))).astype(jnp.bfloat16)
    b = jnp.pad(bias.astype(jnp.float32).reshape(1, -1), ((0, 0), (0, Np - Cout)))
    return PackedDeconv(Wm, b, K, Cout)


# --------------------------------------------------------------------------
# Pallas fused matmul kernel: act((A @ W) + bias [+ residual])
# --------------------------------------------------------------------------
def _mm_kernel(*refs, activation, has_residual, multi_k, k_axis):
    if multi_k:
        acc_ref = refs[-1]
        refs = refs[:-1]
    o_ref = refs[-1]
    ins = refs[:-1]
    if has_residual:
        a_ref, w_ref, b_ref, r_ref = ins
    else:
        a_ref, w_ref, b_ref = ins
        r_ref = None

    def epilogue(acc):
        y = acc + b_ref[...]
        if has_residual:
            y = y + r_ref[...].astype(jnp.float32)
        if activation == "relu":
            y = jnp.maximum(y, 0.0)
        elif activation == "sigmoid":
            y = jax.nn.sigmoid(y)
        o_ref[...] = y.astype(o_ref.dtype)

    prod = jnp.dot(a_ref[...], w_ref[...], preferred_element_type=jnp.float32)

    if not multi_k:
        # Single K step: no accumulator scratch, straight dot -> epilogue -> store.
        epilogue(prod)
    else:
        k = pl.program_id(k_axis)

        @pl.when(k == 0)
        def _():
            acc_ref[...] = prod          # direct assign: no zero-fill pass

        @pl.when(k > 0)
        def _():
            acc_ref[...] += prod

        @pl.when(k == pl.num_programs(k_axis) - 1)
        def _():
            epilogue(acc_ref[...])


def _largest_tk(Kp, cap):
    if Kp <= cap:
        return Kp
    t = (cap // 128) * 128
    while t > 128:
        if Kp % t == 0:
            return t
        t -= 128
    return 128


def _select_tiles(M, Kp, Np, has_res, out_bytes):
    if M >= 512:
        tm = 512
    elif M >= 256:
        tm = 256
    elif M >= 128:
        tm = 128
    else:
        tm = max(16, round_up(M, 16))

    small_m = M <= 64
    target = min(Np, 512 if small_m else 256)
    tn = 128
    for c in (512, 256, 128):
        if c <= target and Np % c == 0:
            tn = c
            break
    # v7x (2 TensorCores): give the parallel N axis >= 2 blocks for the tiny-M,
    # weight-streaming layers so both cores stream weights.  Single-TC chips
    # (v6e/v5e) keep the wide tn (minimum grid steps, full MXU columns).
    if small_m and _NUM_TC >= 2 and Np >= 256 and Np // tn < 2:
        tn = max(128, tn // 2)

    cap = _MAX_TK
    while True:
        tk = _largest_tk(Kp, cap)
        nk = Kp // tk
        wbuf = 3 if (nk > 1 and _HAS_BUFFERED) else 2
        vmem = (2 * tm * tk * 2 + wbuf * tk * tn * 2 + 2 * tm * tn * out_bytes
                + (tm * tn * 4 if nk > 1 else 0)
                + (2 * tm * tn * 2 if has_res else 0) + 2 * tn * 4)
        if vmem <= _VMEM_BUDGET:
            return tm, tk, tn, nk
        if cap > 512:
            cap //= 2
        elif tm > 128:
            tm //= 2
        elif tn > 128:
            tn //= 2
        else:
            return tm, tk, tn, nk


def fused_matmul(a, pc, activation="none", residual=None, out_dtype=jnp.bfloat16):
    M, Ka = a.shape
    Wm, b_p = pc.w, pc.b
    Kp, Np = Wm.shape
    O = pc.O
    has_res = residual is not None
    out_bytes = jnp.dtype(out_dtype).itemsize
    tm, tk, tn, nk = _select_tiles(M, Kp, Np, has_res, out_bytes)
    Mp = round_up(M, tm)
    multi_k = nk > 1

    a = a.astype(jnp.bfloat16)
    if Mp > M or Kp > Ka:
        a = jnp.pad(a, ((0, Mp - M), (0, Kp - Ka)))

    w_spec_kwargs = {}
    if multi_k and _HAS_BUFFERED:
        # v5e: deepen the weight DMA pipeline on the big multi-step weight streams.
        w_spec_kwargs["pipeline_mode"] = pl.Buffered(3)
    in_specs = [
        pl.BlockSpec((tm, tk), lambda i, j, k: (i, k)),
        pl.BlockSpec((tk, tn), lambda i, j, k: (k, j), **w_spec_kwargs),
        pl.BlockSpec((1, tn), lambda i, j, k: (0, j)),
    ]
    args = [a, Wm, b_p]
    if has_res:
        r = residual.astype(jnp.bfloat16)
        if Mp > M or Np > O:
            r = jnp.pad(r, ((0, Mp - M), (0, Np - O)))
        in_specs.append(pl.BlockSpec((tm, tn), lambda i, j, k: (i, j)))
        args.append(r)

    flops = 2 * Mp * Kp * Np
    bytes_acc = (Mp * Kp + Kp * Np) * 2 + Mp * Np * out_bytes + Np * 4
    if has_res:
        bytes_acc += Mp * Np * 2
    trans = Mp * Np if activation == "sigmoid" else 0

    out = pl.pallas_call(
        functools.partial(_mm_kernel, activation=activation, has_residual=has_res,
                          multi_k=multi_k, k_axis=2),
        out_shape=jax.ShapeDtypeStruct((Mp, Np), out_dtype),
        grid_spec=pltpu.PrefetchScalarGridSpec(
            num_scalar_prefetch=0,
            grid=(Mp // tm, Np // tn, nk),
            in_specs=in_specs,
            out_specs=pl.BlockSpec((tm, tn), lambda i, j, k: (i, j)),
            scratch_shapes=[pltpu.VMEM((tm, tn), jnp.float32)] if multi_k else [],
        ),
        compiler_params=pltpu.CompilerParams(
            dimension_semantics=("parallel", "parallel", "arbitrary"),
            vmem_limit_bytes=_VMEM_LIMIT),
        cost_estimate=pl.CostEstimate(flops=flops, bytes_accessed=bytes_acc,
                                      transcendentals=trans),
    )(*args)
    return out[:M, :O]


def fused_matmul_parity(a_stack, dc, activation="relu", out_dtype=jnp.bfloat16):
    """One pallas_call for all 4 deconv parity sub-convs (leading parity axis)."""
    P, M, Ka = a_stack.shape
    Wm, b_p = dc.w, dc.b                      # (P, Kp, Np), (1, Np)
    _, Kp, Np = Wm.shape
    O = dc.O
    out_bytes = jnp.dtype(out_dtype).itemsize
    tm, tk, tn, nk = _select_tiles(M, Kp, Np, False, out_bytes)
    Mp = round_up(M, tm)
    multi_k = nk > 1

    a_stack = a_stack.astype(jnp.bfloat16)
    if Mp > M or Kp > Ka:
        a_stack = jnp.pad(a_stack, ((0, 0), (0, Mp - M), (0, Kp - Ka)))

    w_spec_kwargs = {}
    if multi_k and _HAS_BUFFERED:
        w_spec_kwargs["pipeline_mode"] = pl.Buffered(3)
    in_specs = [
        pl.BlockSpec((None, tm, tk), lambda p, i, j, k: (p, i, k)),
        pl.BlockSpec((None, tk, tn), lambda p, i, j, k: (p, k, j), **w_spec_kwargs),
        pl.BlockSpec((1, tn), lambda p, i, j, k: (0, j)),
    ]

    flops = 2 * P * Mp * Kp * Np
    bytes_acc = P * ((Mp * Kp + Kp * Np) * 2 + Mp * Np * out_bytes) + Np * 4

    out = pl.pallas_call(
        functools.partial(_mm_kernel, activation=activation, has_residual=False,
                          multi_k=multi_k, k_axis=3),
        out_shape=jax.ShapeDtypeStruct((P, Mp, Np), out_dtype),
        grid_spec=pltpu.PrefetchScalarGridSpec(
            num_scalar_prefetch=0,
            grid=(P, Mp // tm, Np // tn, nk),
            in_specs=in_specs,
            out_specs=pl.BlockSpec((None, tm, tn), lambda p, i, j, k: (p, i, j)),
            scratch_shapes=[pltpu.VMEM((tm, tn), jnp.float32)] if multi_k else [],
        ),
        compiler_params=pltpu.CompilerParams(
            dimension_semantics=("parallel", "parallel", "parallel", "arbitrary"),
            vmem_limit_bytes=_VMEM_LIMIT),
        cost_estimate=pl.CostEstimate(flops=flops, bytes_accessed=bytes_acc,
                                      transcendentals=0),
    )(a_stack, Wm, b_p)
    return out[:, :M, :O]


# --------------------------------------------------------------------------
# Conv / deconv / maxpool wrappers (layout glue in JAX, matmul in Pallas)
# --------------------------------------------------------------------------
def conv2d(x, pc, stride=1, padding=0, activation="none", residual=None,
           out_dtype=jnp.bfloat16):
    """x: NHWC (bf16), pc: PackedConv. Optional fused residual (NHWC, O chans)."""
    N, H, W, C = x.shape
    kH, kW = pc.kH, pc.kW
    OH = (H + 2 * padding - kH) // stride + 1
    OW = (W + 2 * padding - kW) // stride + 1
    Kp = pc.w.shape[0]

    if kH == 1 and kW == 1 and padding == 0:
        xs = x if stride == 1 else x[:, ::stride, ::stride, :]
        A = xs.reshape(N * OH * OW, C)
    else:
        xp = jnp.pad(x, ((0, 0), (padding, padding), (padding, padding), (0, 0)))
        cols = []
        for i in range(kH):
            for j in range(kW):
                cols.append(xp[:, i:i + stride * (OH - 1) + 1:stride,
                               j:j + stride * (OW - 1) + 1:stride, :])
        K = kH * kW * C
        if Kp > K:
            # build the im2col matrix already K-padded (single materialization)
            cols.append(jnp.zeros((N, OH, OW, Kp - K), x.dtype))
        A = jnp.concatenate(cols, axis=-1).reshape(N * OH * OW, -1)

    r = None if residual is None else residual.reshape(N * OH * OW, pc.O)
    y = fused_matmul(A, pc, activation, residual=r, out_dtype=out_dtype)
    return y.reshape(N, OH, OW, pc.O)


def conv_transpose2d(x, dc, activation="relu"):
    """ConvTranspose2d(k=4, s=2, p=1) via 4 interleaved 2x2 parity sub-convs,
    all run in one pallas_call (stacked parity axis)."""
    N, H, W, Cin = x.shape
    xp = jnp.pad(x, ((0, 0), (1, 1), (1, 1), (0, 0)))
    K = 4 * Cin
    Kp = dc.w.shape[1]
    a_mats = []
    for (py, px) in ((0, 0), (0, 1), (1, 0), (1, 1)):
        xs = xp[:, py:py + H + 1, px:px + W + 1, :]
        cols = [xs[:, i:i + H, j:j + W, :] for i in range(2) for j in range(2)]
        if Kp > K:
            cols.append(jnp.zeros((N, H, W, Kp - K), x.dtype))
        a_mats.append(jnp.concatenate(cols, axis=-1).reshape(N * H * W, -1))
    A = jnp.stack(a_mats, axis=0)                       # (4, M, Kp)

    y = fused_matmul_parity(A, dc, activation=activation)   # (4, M, Cout)
    Cout = dc.O
    y = y.reshape(4, N, H, W, Cout)
    y00, y01, y10, y11 = y[0], y[1], y[2], y[3]
    ye = jnp.stack([y00, y01], axis=3).reshape(N, H, 2 * W, Cout)   # even output rows
    yo = jnp.stack([y10, y11], axis=3).reshape(N, H, 2 * W, Cout)   # odd output rows
    return jnp.stack([ye, yo], axis=2).reshape(N, 2 * H, 2 * W, Cout)


def maxpool_3x3_s2_p1(x):
    """MaxPool2d(3, stride=2, padding=1) on NHWC as an XLA max-tree over strided
    slices (review-approved): no 9x window materialization, single tiny layer."""
    N, H, W, C = x.shape
    xp = jnp.pad(x, ((0, 0), (1, 1), (1, 1), (0, 0)), constant_values=-jnp.inf)
    OH = (H + 2 - 3) // 2 + 1
    OW = (W + 2 - 3) // 2 + 1
    out = None
    for i in range(3):
        for j in range(3):
            win = xp[:, i:i + 2 * (OH - 1) + 1:2, j:j + 2 * (OW - 1) + 1:2, :]
            out = win if out is None else jnp.maximum(out, win)
    return out


# --------------------------------------------------------------------------
# Parameters (deterministic, matching the module's _init_weights), pre-packed
# --------------------------------------------------------------------------
class KeyGen:
    def __init__(self, seed=0):
        self.key = jax.random.PRNGKey(seed)

    def __call__(self):
        self.key, sub = jax.random.split(self.key)
        return sub


def conv_w(kg, o, c, kh, kw):
    std = math.sqrt(2.0 / (kh * kw * o))
    return jax.random.normal(kg(), (o, c, kh, kw), jnp.float32) * std


def bn_sb(c):
    """Fold inference BatchNorm (gamma=1, beta=0, mean=0, var=1) into scale/bias."""
    return (jnp.full((c,), 1.0 / math.sqrt(1.0 + BN_EPS), jnp.float32),
            jnp.zeros((c,), jnp.float32))


def make_params(num_classes=NUM_CLASSES):
    kg = KeyGen(0)
    P = {}
    s, b = bn_sb(64)
    P["conv1"] = pack_conv(conv_w(kg, 64, 3, 7, 7), s, b)

    layers = []
    inplanes = 64
    for planes, blocks, _stride in RESNET50_CFG:
        blks = []
        for bi in range(blocks):
            s1, b1 = bn_sb(planes)
            s3, b3 = bn_sb(planes * 4)
            blk = {
                "c1": pack_conv(conv_w(kg, planes, inplanes, 1, 1), s1, b1),
                "c2": pack_conv(conv_w(kg, planes, planes, 3, 3), s1, b1),
                "c3": pack_conv(conv_w(kg, planes * 4, planes, 1, 1), s3, b3),
            }
            if bi == 0:
                blk["cd"] = pack_conv(conv_w(kg, planes * 4, inplanes, 1, 1), s3, b3)
            blks.append(blk)
            inplanes = planes * 4
        layers.append(blks)
    P["layers"] = layers

    # decoder: 3x ConvTranspose2d(k=4, s=2, p=1, bias=False) -> BN -> ReLU
    dec = []
    cin = 2048
    for cout in (256, 128, 64):
        w = jax.random.normal(kg(), (cin, cout, 4, 4), jnp.float32) * math.sqrt(2.0 / (16 * cout))
        sc, bc = bn_sb(cout)
        dec.append(pack_deconv(w, sc, bc))
        cin = cout
    P["decoder"] = dec

    # head: three 3x3 stems (BN+ReLU) fused into one 192-channel conv, then the
    # three 1x1s fused into one block-diagonal (192 -> nc+4) conv.
    nc = num_classes
    cls_w1 = conv_w(kg, 64, 64, 3, 3)
    cls_w2 = conv_w(kg, nc, 64, 1, 1)       # drawn, then zeroed (matches _init_weights)
    wh_w1 = conv_w(kg, 64, 64, 3, 3)
    wh_w2 = conv_w(kg, 2, 64, 1, 1)
    reg_w1 = conv_w(kg, 64, 64, 3, 3)
    reg_w2 = conv_w(kg, 2, 64, 1, 1)

    stem_w = jnp.concatenate([cls_w1, wh_w1, reg_w1], axis=0)   # (192, 64, 3, 3)
    ss, sbias = bn_sb(192)
    P["head_stem"] = pack_conv(stem_w, ss, sbias)

    oc = nc + 4
    head_w = jnp.zeros((oc, 192, 1, 1), jnp.float32)
    head_w = head_w.at[:nc, 0:64].set(jnp.zeros_like(cls_w2))   # cls weight = 0
    head_w = head_w.at[nc:nc + 2, 64:128].set(wh_w2)
    head_w = head_w.at[nc + 2:nc + 4, 128:192].set(reg_w2)
    head_b = jnp.concatenate([jnp.full((nc,), -2.19, jnp.float32),
                              jnp.zeros((4,), jnp.float32)])
    P["head_out"] = pack_conv(head_w, jnp.ones((oc,), jnp.float32), head_b)
    return P


# --------------------------------------------------------------------------
# Forward pass
# --------------------------------------------------------------------------
def bottleneck(x, blk, stride):
    out = conv2d(x, blk["c1"], 1, 0, "relu")
    out = conv2d(out, blk["c2"], stride, 1, "relu")
    if "cd" in blk:
        identity = conv2d(x, blk["cd"], stride, 0, "none")
    else:
        identity = x
    # residual add + ReLU fused into the third conv's matmul epilogue
    return conv2d(out, blk["c3"], 1, 0, "relu", residual=identity)


def forward(params, x_nchw):
    x = jnp.transpose(x_nchw, (0, 2, 3, 1)).astype(jnp.bfloat16)   # -> NHWC bf16

    # backbone (ResNet-50 -> layer4 features, stride 32, 2048 ch)
    x = conv2d(x, params["conv1"], stride=2, padding=3, activation="relu")
    x = maxpool_3x3_s2_p1(x)
    for li, (planes, blocks, stride) in enumerate(RESNET50_CFG):
        for bi in range(blocks):
            x = bottleneck(x, params["layers"][li][bi], stride if bi == 0 else 1)

    # decoder: 3x (deconv 4x4/2 -> BN -> ReLU): 2048 -> 256 -> 128 -> 64
    for dc in params["decoder"]:
        x = conv_transpose2d(x, dc, activation="relu")

    # head (fused 192-channel stem, then one fused block-diagonal 1x1)
    h = conv2d(x, params["head_stem"], 1, 1, "relu")
    y = conv2d(h, params["head_out"], 1, 0, "none", out_dtype=jnp.float32)
    nc = params["head_out"].O - 4
    hm = jax.nn.sigmoid(y[..., :nc])
    wh = y[..., nc:nc + 2]
    offset = y[..., nc + 2:nc + 4]

    to_nchw = lambda t: jnp.transpose(t, (0, 3, 1, 2))
    return to_nchw(hm), to_nchw(wh), to_nchw(offset)


# --------------------------------------------------------------------------
# Small numeric self-checks (address review correctness concerns)
# --------------------------------------------------------------------------
def _check_deconv_decomposition():
    """Validate the 2x2 parity decomposition against XLA's dilated-conv form of
    ConvTranspose2d(k=4, s=2, p=1)."""
    key = jax.random.PRNGKey(42)
    k1, k2 = jax.random.split(key)
    Cin, Cout, H = 8, 4, 4
    x = jax.random.normal(k1, (1, H, H, Cin), jnp.float32)
    w = jax.random.normal(k2, (Cin, Cout, 4, 4), jnp.float32) * 0.25
    xq = x.astype(jnp.bfloat16).astype(jnp.float32)

    dc = pack_deconv(w, jnp.ones((Cout,), jnp.float32), jnp.zeros((Cout,), jnp.float32))
    got = conv_transpose2d(xq.astype(jnp.bfloat16), dc, activation="none").astype(jnp.float32)

    # ConvTranspose(s=2, p=1, k=4) == conv(lhs_dilation=2, pad=k-1-p=2, flipped kernel)
    w_conv = jnp.flip(jnp.transpose(w, (2, 3, 0, 1)), axis=(0, 1))   # HWIO
    ref = jax.lax.conv_general_dilated(
        xq, w_conv, window_strides=(1, 1), padding=((2, 2), (2, 2)),
        lhs_dilation=(2, 2), dimension_numbers=("NHWC", "HWIO", "NHWC"))
    assert float(jnp.max(jnp.abs(got - ref))) < 0.15, "deconv parity decomposition mismatch"


def _check_fused_residual():
    """Validate the fused residual-add + ReLU epilogue against a jnp reference."""
    key = jax.random.PRNGKey(7)
    k1, k2, k3 = jax.random.split(key, 3)
    a = jax.random.normal(k1, (64, 96), jnp.float32)
    w = jax.random.normal(k2, (32, 96, 1, 1), jnp.float32) * 0.1
    r = jax.random.normal(k3, (64, 32), jnp.float32)
    bias = jnp.linspace(-1.0, 1.0, 32, dtype=jnp.float32)
    pc = pack_conv(w, jnp.ones((32,), jnp.float32), bias)

    got = fused_matmul(a, pc, "relu", residual=r, out_dtype=jnp.float32)
    a_q = a.astype(jnp.bfloat16).astype(jnp.float32)
    r_q = r.astype(jnp.bfloat16).astype(jnp.float32)
    w_q = pc.w.astype(jnp.float32)[:96, :32]
    ref = jnp.maximum(a_q @ w_q + bias[None, :] + r_q, 0.0)
    assert float(jnp.max(jnp.abs(got - ref))) < 0.1, "fused residual epilogue mismatch"


# --------------------------------------------------------------------------
if __name__ == "__main__":
    _check_deconv_decomposition()
    _check_fused_residual()

    params = make_params(num_classes=NUM_CLASSES)
    x = jax.random.normal(jax.random.PRNGKey(0), (2, 3, 64, 64), jnp.float32)

    fwd = jax.jit(forward)
    hm, wh, offset = fwd(params, x)
    jax.block_until_ready((hm, wh, offset))

    assert hm.shape == (2, NUM_CLASSES, 16, 16)
    assert wh.shape == (2, 2, 16, 16)
    assert offset.shape == (2, 2, 16, 16)
    # cls head last conv: weight = 0, bias = -2.19  =>  hm == sigmoid(-2.19) everywhere
    expected = 1.0 / (1.0 + math.exp(2.19))
    assert abs(float(hm[0, 0, 0, 0]) - expected) < 1e-4
    assert bool(jnp.all(jnp.isfinite(wh))) and bool(jnp.all(jnp.isfinite(offset)))
    print("KERNEL_OK")
</pallas_src>

<mosaic_0001>
module attributes {stable_mosaic.version = 11 : i64} {
  func.func @_mm_kernel(%arg0: i32, %arg1: i32, %arg2: i32, %arg3: i32, %arg4: memref<1x16x128xbf16, #tpu.memory_space<vmem>>, %arg5: memref<1x128x128xbf16, #tpu.memory_space<vmem>>, %arg6: memref<1x128xf32, #tpu.memory_space<vmem>>, %arg7: memref<1x16x128xbf16, #tpu.memory_space<vmem>>) attributes {dimension_semantics = [#tpu.dimension_semantics<parallel>, #tpu.dimension_semantics<parallel>, #tpu.dimension_semantics<parallel>, #tpu.dimension_semantics<arbitrary>], iteration_bounds = array<i64: 4, 1, 1, 1>, scalar_prefetch = 0 : i64, scratch_operands = 0 : i64, tpu.core_type = #tpu.core_type<tc>, window_params = [{transform_indices = @transform_0, window_bounds = array<i64: 1, 16, 128>}, {transform_indices = @transform_1, window_bounds = array<i64: 1, 128, 128>}, {transform_indices = @transform_2, window_bounds = array<i64: 1, 128>}, {transform_indices = @transform_3, window_bounds = array<i64: 1, 16, 128>}]} {
    %c0 = arith.constant 0 : index
    %c0_0 = arith.constant 0 : index
    %c0_1 = arith.constant 0 : index
    %0 = vector.load %arg4[%c0, %c0_0, %c0_1] : memref<1x16x128xbf16, #tpu.memory_space<vmem>>, vector<1x16x128xbf16>
    %1 = vector.shape_cast %0 : vector<1x16x128xbf16> to vector<16x128xbf16>
    %c0_2 = arith.constant 0 : index
    %c0_3 = arith.constant 0 : index
    %c0_4 = arith.constant 0 : index
    %2 = vector.load %arg5[%c0_2, %c0_3, %c0_4] : memref<1x128x128xbf16, #tpu.memory_space<vmem>>, vector<1x128x128xbf16>
    %3 = vector.shape_cast %2 : vector<1x128x128xbf16> to vector<128x128xbf16>
    %cst = arith.constant dense<0.000000e+00> : vector<16x128xf32>
    %4 = tpu.matmul %1, %3, %cst {dimension_numbers = #tpu.dot_dimension_numbers<[1], [0], [0], [1], [0, 0, 1, 1], [], []>} : vector<16x128xbf16>, vector<128x128xbf16>, vector<16x128xf32> -> vector<16x128xf32>
    %c0_5 = arith.constant 0 : index
    %c0_6 = arith.constant 0 : index
    %5 = vector.load %arg6[%c0_5, %c0_6] : memref<1x128xf32, #tpu.memory_space<vmem>>, vector<1x128xf32>
    %6 = vector.broadcast %5 : vector<1x128xf32> to vector<16x128xf32>
    %7 = arith.addf %4, %6 : vector<16x128xf32>
    %8 = arith.truncf %7 : vector<16x128xf32> to vector<16x128xbf16>
    %c0_7 = arith.constant 0 : index
    %c0_8 = arith.constant 0 : index
    %c0_9 = arith.constant 0 : index
    %9 = vector.load %arg7[%c0_7, %c0_8, %c0_9] : memref<1x16x128xbf16, #tpu.memory_space<vmem>>, vector<1x16x128xbf16>
    %10 = vector.shape_cast %9 : vector<1x16x128xbf16> to vector<16x128xbf16>
    %11 = vector.shape_cast %8 : vector<16x128xbf16> to vector<1x16x128xbf16>
    tpu.vector_store %arg7[%c0_7, %c0_8, %c0_9], %11 {strides = array<i32>} : memref<1x16x128xbf16, #tpu.memory_space<vmem>>, vector<1x16x128xbf16>,
    return
  }
  func.func @transform_0(%arg0: i32, %arg1: i32, %arg2: i32, %arg3: i32) -> (i32, i32, i32) {
    %c0_i32 = arith.constant 0 : i32
    return %arg0, %arg1, %arg3 : i32, i32, i32
  }
  func.func @transform_1(%arg0: i32, %arg1: i32, %arg2: i32, %arg3: i32) -> (i32, i32, i32) {
    %c0_i32 = arith.constant 0 : i32
    return %arg0, %arg3, %arg2 : i32, i32, i32
  }
  func.func @transform_2(%arg0: i32, %arg1: i32, %arg2: i32, %arg3: i32) -> (i32, i32) {
    %c0_i32 = arith.constant 0 : i32
    %c0_i32_0 = arith.constant 0 : i32
    return %c0_i32, %arg2 : i32, i32
  }
  func.func @transform_3(%arg0: i32, %arg1: i32, %arg2: i32, %arg3: i32) -> (i32, i32, i32) {
    %c0_i32 = arith.constant 0 : i32
    return %arg0, %arg1, %arg2 : i32, i32, i32
  }
}

</mosaic_0001>

<bundles_post_ra>
// kernel: tpu_custom_call.1
= control target key start
LH: loop header
LB: loop body
LE: loop exit
PB: predicated region body
PF: predicated region fallthrough
CT: control target
= control target key end

     0   :  { %s1077_s0 = inlined_call_operand.hbm [shape: bf16[4,16,128], index: 0, kind: input, shape index: {}]   ;;  %s1078_s1 = inlined_call_operand.hbm [shape: bf16[4,128,128], index: 1, kind: input, shape index: {}]   ;;  %s1079_s2 = inlined_call_operand.vmem [shape: f32[1,128], index: 2, kind: input, shape index: {}]   ;;  %s1080_s3 = inlined_call_operand.hbm [shape: bf16[4,16,128], index: 3, kind: output, shape index: {}]  }
   0x1   :  { %1081 = sst [smem:[#allocation11_spill]] %s1077_s0 }
   0x2   :  { %8 = vsyncpa [#allocation3], 0 }
   0x3   :  { %10 = vsyncpa [#allocation3 + $0x1], 0 }
   0x4   :  { %11 = vsyncpa [#allocation6], 0 }
   0x5   :  { %13 = vsyncpa [#allocation6 + $0x1], 0 }
   0x6   :  { %14 = vsyncpa [#allocation4], 0 }
   0x7   :  { %16 = vsyncpa [#allocation4 + $0x1], 0  ;;  %s893_s12 = smov 0   ;;  %s895_s13 = smov 0  }
   0x8   :  { %s897_s14 = smov 0   ;;  %s899_s15 = smov 0  }
   0x9   :  { %s901_s16 = smov 0   ;;  %s903_s17 = smov 0  }
   0xa LB: > { %s569_s18 = sadd.s32 4294967295, %s862_s17   ;;  %s570_s19 = sadd.s32 4294967294, %s862_s17   ;;  %s862_s17 = sphi %s903_s17, %s22_s17   ;;  %s858_s16 = sphi %s901_s16, %s1093_s16   ;;  %s854_s15 = sphi %s899_s15, %s1092_s15   ;;  %s850_s14 = sphi %s897_s14, %s1091_s14   ;;  %s846_s13 = sphi %s895_s13, %s1090_s13   ;;  %s842_s12 = sphi %s893_s12, %s1089_s12  }
   0xb   : > { %s48_s20 = sadd.s32 1, %s858_s16  ;;  %s59_s21 = sadd.s32 1, %s850_s14 }
   0xc   : > { %p50_p0 = scmp.ge.s32.totalorder %s48_s20, 4  ;;  %p66_p1 = scmp.ne.s32.totalorder %s850_s14, %s846_s13 }
   0xd   : > { %p67_p2 = scmp.eq.s32.totalorder %s862_s17, 0  ;;  %p72_p3 = scmp.ne.s32.totalorder %s846_s13, %s842_s12 }
   0xe   : > { %s1095_s20 = smov (%p50_p0, %s48_s20), 0  ;;  %p73_p5 = scmp.eq.s32.totalorder %s569_s18, 0 }
   0xf   : > { %p934_p4 = por %p67_p2, %p66_p1  ;;  %s52_s23 = ssub.s32 %s858_s16, %s1095_s20 }
  0x10   : > { %p156_p6 = scmp.eq.s32.totalorder %s569_s18, 3  ;;  %p57_p7 = scmp.eq.s32.totalorder %s52_s23, 0 }
  0x11   : > { %p940_p8 = por %p73_p5, %p72_p3  ;;  %p162_p10 = scmp.eq.s32.totalorder %s570_s19, 3 }
  0x12   : > { %p944_p9 = por %p156_p6, %p66_p1  ;;  %p657_p12 = scmp.lt.s32.totalorder %s862_s17, 4 }
  0x13   : > { %s949_s26 = scalar_select %p57_p7, %s850_s14, %s59_s21  }
  0x14   : > { %p951_p11 = por %p162_p10, %p72_p3  ;;  %s957_s28 = sand.u32 1, %s850_s14  }
  0x15   : > { %s574_s29 = sshll.u32 %s957_s28, 3  ;;  %s601_s30 = sshll.u32 %s858_s16, 7 }
  0x16   : > { %s1086_s0 = sld [smem:[#allocation11_spill]]  ;;  %s192_s7 = scalar_lea.vmem [#allocation2], %s574_s29 }
  0x17   : > { %s202_s8 = sshll.u32 %s192_s7, 4  ;;  %p966_p13 = pnand %p657_p12, %p934_p4  ;;  %s203_s8 = int_to_ptr.vmem [resolvable:$true] %s202_s8 }
  0x18   : > { %p580_p0 = scmp.ge.s32.totalorder %s862_s17, 1  ;;  %s189_s10 = scalar_lea.sflag [#allocation3], %s957_s28 }
  0x19   : > { %p724_p1 = pneg %p966_p13  ;;  %s735_s11 = scalar_lea.vmem %s203_s8, 128 }
  0x1a   : > { %p736_p2 = scmp.ne.s32.totalorder %s203_s8, %s735_s11  ;;  %s864_s18 = smov [#allocation2]  }
  0x1b   : > { %s740_s19 = sshll.u32 %s864_s18, 4  ;;  %s741_s19 = int_to_ptr.vmem [resolvable:$false] %s740_s19 }
  0x1c   : > { %s201_s6 = scalar_lea.hbm %s1086_s0, %s601_s30  ;;  %p738_p3 = pnand %p736_p2, %p724_p1 }
  0x1d   : > { %s742_s21 = scalar_lea.vmem %s741_s19, 256  ;;  %p743_p4 = scmp.lt.s32.totalorder %s203_s8, %s741_s19 }
  0x1e   : > { %p739_p5 = pneg %p738_p3  ;;  %p744_p6 = scmp.lt.s32.totalorder %s742_s21, %s735_s11 }
  0x20   : > { %p745_p7 = por %p744_p6, %p743_p4 }
  0x22   : > { %p746_p10 = pnand %p745_p7, %p739_p5 }
  0x24   : > { %749 = shalt.err (!%p746_p10)
}
  0x25   : > { %s865_s22 = smov 64   ;;  %s866_s23 = smov 4  }
  0x26   : > { %649 = dma.hbm_to_vmem [thread:$0]  (!%p966_p13), %s201_s6, 128, %s203_s8, %s189_s10, %s865_s22, %s865_s22, %s866_s23  }
  0x27   : > { %p234_p12 = scmp.lt.s32.totalorder %s862_s17, 5  ;;  %s577_s29 = sshll.u32 %s957_s28, 6 }
  0x28   : > { %s602_s30 = sshll.u32 %s858_s16, 10  ;;  %s216_s18 = scalar_lea.vmem [#allocation5], %s577_s29 }
  0x29   : > { %p984_p2 = pnand %p580_p0, %p234_p12  ;;  %s225_s11 = scalar_lea.hbm %s1078_s1, %s602_s30 }
  0x2a   : > { %s226_s19 = sshll.u32 %s216_s18, 4  ;;  %s213_s21 = scalar_lea.sflag [#allocation6], %s957_s28  ;;  %s227_s19 = int_to_ptr.vmem [resolvable:$true] %s226_s19 }
  0x2b   : > { %s763_s0 = scalar_lea.vmem %s227_s19, 1024  ;;  %s867_s6 = smov [#allocation5]  }
  0x2c   : > { %p764_p3 = scmp.ne.s32.totalorder %s227_s19, %s763_s0  ;;  %s768_s8 = sshll.u32 %s867_s6, 4  ;;  %s769_s8 = int_to_ptr.vmem [resolvable:$false] %s768_s8 }
  0x2d   : > { %s770_s10 = scalar_lea.vmem %s769_s8, 2048  ;;  %p771_p0 = scmp.lt.s32.totalorder %s227_s19, %s769_s8 }
  0x2e   : > { %p766_p5 = pnand %p764_p3, %p724_p1  ;;  %p772_p6 = scmp.lt.s32.totalorder %s770_s10, %s763_s0 }
  0x30   : > { %p767_p4 = pneg %p766_p5  ;;  %p773_p7 = por %p772_p6, %p771_p0 }
  0x32   : > { %p774_p10 = pnand %p773_p7, %p767_p4 }
  0x34   : > { %777 = shalt.err (!%p774_p10)
}
  0x35   : > { %652 = dma.hbm_to_vmem [thread:$0]  (!%p966_p13), %s225_s11, 1024, %s227_s19, %s213_s21, %s865_s22, %s865_s22, %s866_s23  }
  0x36   : > { %238 = sbr.rel (%p984_p2) target bundleno = 311 (0x137), region = 32  ;;  %s1000_s28 = sand.u32 (!%p984_p2), 1, %s846_s13  }
  0x37   : > { %s581_s29 = sshll.u32 (!%p984_p2), %s1000_s28, 3  ;;  %s241_s30 = scalar_lea.sflag (!%p984_p2), [#allocation3], %s1000_s28 }
  0x38   : > { %s1006_s0 = scalar_lea.vmem (!%p984_p2), [#allocation2], %s581_s29 }
  0x3b   : > { %829 = dma.done.wait (%p940_p8), %s241_s30, 128  }
  0x3c   : > { %831 = vsyncadd (%p940_p8), %s241_s30, 4294967168  ;;  %s582_s9 = sshll.u32 %s1000_s28, 6  ;;  %s250_s22 = scalar_lea.sflag [#allocation6], %s1000_s28 }
  0x3d   : > { %s253_s23 = scalar_lea.vmem [#allocation5], %s582_s9 }
  0x3e   : > { %833 = dma.done.wait (%p940_p8), %s250_s22, 1024  }
  0x3f   : > { %835 = vsyncadd (%p940_p8), %s250_s22, 4294966272  ;;  %v868_v0 = vmov 0.0   ;;  %vm869_vm0 = vmmov 0   ;;  %v713_v1 = vld [vmem:[%s253_s23 + $0x38] sm:$0xff]   ;;  %v714_v2 = vld [vmem:[%s253_s23 + $0x30] sm:$0xff]   ;;  %s283_s5 = scalar_lea.vmem [#allocation7], %s581_s29 }
  0x40   : > { %620 = vmatprep.subr.bf16.mxu0 %v868_v0  ;;  %636 = vmatprep.mubr.msk.bf16.mxu0 %vm869_vm0, %v868_v0  ;;  %v715_v3 = vld [vmem:[%s253_s23 + $0x28] sm:$0xff]   ;;  %v716_v4 = vld [vmem:[%s253_s23 + $0x20] sm:$0xff]   ;;  %v717_v5 = vld [vmem:[%s253_s23 + $0x18] sm:$0xff]   ;;  %s438_s7 = sshll.u32 %s283_s5, 4  ;;  %s605_s11 = sshll.u32 %s854_s15, 7  ;;  %s1025_s7 = int_to_ptr.vmem [resolvable:$true] %s438_s7 }
  0x41   : > { %621 = vmatpush3.bf16.msra.mxu0 %v713_v1  ;;  %v718_v6 = vld [vmem:[%s253_s23 + $0x10] sm:$0xff]   ;;  %v719_v7 = vld [vmem:[%s253_s23 + $0x8] sm:$0xff]   ;;  %v720_v8 = vld [vmem:[%s253_s23] sm:$0xff]   ;;  %s1030_s21 = scalar_lea.hbm %s1080_s3, %s605_s11  ;;  %s422_s6 = scalar_lea.sflag [#allocation4], %s1000_s28 }
  0x42   : > { %622 = vmatprep.subr.bf16.mxu0 %v868_v0  ;;  %v721_v9 = vld [vmem:[%s1006_s0] sm:$0xff]   ;;  %s778_s8 = scalar_lea.vmem %s1025_s7, 128  ;;  %s870_s15 = smov [#allocation7]  }
  0x43   : > { %v584_v11 = vld [vmem:[%s1079_s2] ss:$0 sm:$0xff]  ;;  %p779_p8 = scmp.ne.s32.totalorder %s1025_s7, %s778_s8  ;;  %s782_s10 = sshll.u32 %s870_s15, 4  ;;  %s783_s10 = int_to_ptr.vmem [resolvable:$false] %s782_s10 }
  0x44   : > { %s784_s29 = scalar_lea.vmem %s783_s10, 256  ;;  %p785_p12 = scmp.lt.s32.totalorder %s1025_s7, %s783_s10 }
  0x45   : > { %623 = vmatpush3.bf16.msra.mxu0 %v714_v2  ;;  %p780_p13 = pnand %p779_p8, %p944_p9  ;;  %p786_p2 = scmp.lt.s32.totalorder %s784_s29, %s778_s8 }
  0x46   : > { %624 = vmatprep.subr.bf16.mxu0 %v868_v0 }
  0x47   : > { %p781_p1 = pneg %p780_p13  ;;  %p787_p3 = por %p786_p2, %p785_p12 }
  0x49   : > { %625 = vmatpush3.bf16.msra.mxu0 %v715_v3  ;;  %p788_p5 = pnand %p787_p3, %p781_p1 }
  0x4a   : > { %626 = vmatprep.subr.bf16.mxu0 %v868_v0 }
  0x4d   : > { %627 = vmatpush3.bf16.msra.mxu0 %v716_v4 }
  0x4e   : > { %628 = vmatprep.subr.bf16.mxu0 %v868_v0 }
  0x51   : > { %629 = vmatpush3.bf16.msra.mxu0 %v717_v5 }
  0x52   : > { %630 = vmatprep.subr.bf16.mxu0 %v868_v0 }
  0x55   : > { %631 = vmatpush3.bf16.msra.mxu0 %v718_v6 }
  0x56   : > { %632 = vmatprep.subr.bf16.mxu0 %v868_v0 }
  0x59   : > { %633 = vmatpush3.bf16.msra.mxu0 %v719_v7 }
  0x5a   : > { %634 = vmatprep.subr.bf16.mxu0 %v868_v0 }
  0x5d   : > { %635 = vmatpush3.bf16.msra.mxu0 %v720_v8 }
  0x60   : > { %637 = vmatmul.mubr.bf16.vlgmr.msra.gmra.mxu0 %v721_v9 }
 0x120   : > { %v404_v10 = vpop.f32.mrf.mxu0 }
 0x121   : > { %v405_v14 = vadd.f32 %v584_v11, %v404_v10 }
 0x122   : > { %v638_v12 = vpop.f32.mrf.mxu0 }
 0x124   : > { %v407_v13 = vpop.f32.mrf.mxu0 }
 0x125   : > { %v408_v15 = vadd.f32 %v584_v11, %v407_v13 }
 0x126   : > { %v639_v16 = vpop.f32.mrf.mxu0 }
 0x127   : > { %v609_v17 = vpack.c.bf16 %v408_v15, %v405_v14 }
 0x129   : > { %610 = vst [vmem:[%s283_s5] sm:$0xff] %v609_v17  }
 0x12a   : > { %791 = shalt.err (!%p788_p5)
}
 0x12b   : > { %s792_s30 = scalar_lea.hbm %s1030_s21, 128  ;;  %s796_s22 = scalar_lea.hbm %s1080_s3, 512 }
 0x12c   : > { %p793_p4 = scmp.ne.s32.totalorder %s1030_s21, %s792_s30  ;;  %p797_p7 = scmp.lt.s32.totalorder %s1030_s21, %s1080_s3 }
 0x12d   : > { %p798_p10 = scmp.lt.s32.totalorder %s796_s22, %s792_s30 }
 0x12e   : > { %p794_p0 = pnand %p793_p4, %p944_p9 }
 0x12f   : > { %p799_p8 = por %p798_p10, %p797_p7 }
 0x130   : > { %p795_p6 = pneg %p794_p0 }
 0x132   : > { %p800_p13 = pnand %p799_p8, %p795_p6 }
 0x134   : > { %803 = shalt.err (!%p800_p13)
}
 0x135   : > { %s871_s4 = smov 64   ;;  %s872_s5 = smov 4  }
 0x136   : > { %644 = dma.vmem_to_hbm [thread:$0]  (%p944_p9), %s1025_s7, 128, %s1030_s21, %s422_s6, %s871_s4, %s871_s4, %s872_s5  }
 0x137 PF: > { %p658_p1 = scmp.ge.s32.totalorder %s862_s17, 2  ;;  %s453_s11 = sand.u32 1, %s842_s12  }
 0x138   : > { %s454_s18 = scalar_lea.sflag [#allocation4], %s453_s11 }
 0x139   : > { %p654_p12 = pnand %p658_p1, %p951_p11 }
 0x13b   : > { %p655_p2 = pneg %p654_p12 }
 0x13d   : > { %837 = dma.done.wait (%p655_p2), %s454_s18, 128  }
 0x13e   : > { %839 = vsyncadd (%p655_p2), %s454_s18, 4294967168  ;;  %s22_s17 = sadd.s32 1, %s862_s17   ;;  %s1089_s12 = smov %s846_s13 }
 0x13f   : > { %p19_p3 = scmp.ge.s32.totalorder %s22_s17, 6   ;;  %s1090_s13 = smov %s850_s14 }
 0x140   : > { %s1091_s14 = smov %s949_s26  ;;  %s1092_s15 = smov %s858_s16 }
 0x141   : > { %s1093_s16 = smov %s1095_s20  ;;  %21 = sbr.rel (!%p19_p3) target bundleno = 10 (0xa), region = 93 }
 0x146   :  { %459 = vsyncpa [#allocation3], 1 }
 0x147   :  { %461 = vsyncpa [#allocation3 + $0x1], 1 }
 0x148   :  { %462 = vsyncpa [#allocation6], 1 }
 0x149   :  { %464 = vsyncpa [#allocation6 + $0x1], 1 }
 0x14a   :  { %465 = vsyncpa [#allocation4], 1 }
 0x14b   :  { %467 = vsyncpa [#allocation4 + $0x1], 1 }

</bundles_post_ra>
